<compile_context>
chip_gen: v7x
topology: tpu7x:2x2x1
jax: 0.10.0
libtpu: 0.0.40
codegen_flags: <defaults>
</compile_context>

<pallas_src>
import functools
import jax
import jax.numpy as jnp
from jax.experimental import pallas as pl
from jax.experimental.pallas import tpu as pltpu

_MiB = 1024 * 1024


def _round_up(x, m):
    return ((x + m - 1) // m) * m


def _vmem_capacity_bytes():
    try:
        cap = getattr(pltpu.get_tpu_info(), "vmem_capacity_bytes", None)
        if cap:
            return int(cap)
    except Exception:
        pass
    return 64 * _MiB            # conservative fallback (v7x per-TensorCore VMEM)


def _num_tensorcores():
    # v7x has 2 TensorCores per chip; v5e/v6e have 1.  Mis-detection only
    # costs the megacore split (never correctness), so fall back to 1.
    try:
        kind = jax.devices()[0].device_kind.lower().replace(" ", "")
        if "v7" in kind or "7x" in kind:
            return 2
    except Exception:
        pass
    return 1


def _default_block_bytes(vmem_cap):
    # v5e/v6e (128 MiB VMEM, <=1.4 TB/s): 4 MiB blocks already sit at ~85%+ of
    # the HBM roofline.  v7x (64 MiB VMEM, 3.2 TB/s/TC): larger blocks amortize
    # the ~0.35us per-grid-step overhead; keep 2x double-buffering well under
    # the capacity.
    if vmem_cap >= 96 * _MiB:
        return 4 * _MiB
    return int(min(16 * _MiB, max(4 * _MiB, vmem_cap // 5)))


def _pick_tile_rows(n_rows, row_bytes, target_block_bytes):
    rows = max(8, (target_block_bytes // max(row_bytes, 1)) // 8 * 8)
    return int(min(rows, _round_up(n_rows, 8)))


def _split_grid(n_rows, tile_rows, num_splits):
    total_blocks = -(-n_rows // tile_rows)
    if num_splits is None:
        num_splits = _num_tensorcores()
    num_splits = max(1, min(int(num_splits), total_blocks))
    steps = -(-total_blocks // num_splits)
    return total_blocks, num_splits, steps


def _vmem_limit(block_bytes, acc_bytes, vmem_cap):
    needed = 2 * block_bytes + acc_bytes + 4 * _MiB
    return int(min(max(needed, 24 * _MiB), int(0.62 * vmem_cap)))


# ----------------------------------------------------------------------------
# Kernel 1a: masked NLL, binary mask folded into targets (default fast path)
# ----------------------------------------------------------------------------
def _nll_binary_kernel(logp_ref, tgt_ref, out_ref, acc_ref):
    """Accumulates sum_r logp[r, tgt[r]]; tgt == -1 (or out of range) -> 0.

    acc_ref is a lane-dense (8, V) f32 accumulator: the one-hot-selected
    (TM, V) block is reduced over row groups with pure VALU adds (no per-8-row
    XLU lane reduce, no narrow masked stores); one XLU reduce at finalize.
    """
    i = pl.program_id(1)

    @pl.when(i == 0)
    def _init():
        acc_ref[...] = jnp.zeros_like(acc_ref)

    x = logp_ref[...]                                  # (TM, V) native dtype
    tgt = tgt_ref[...]                                 # (TM, 1) i32, -1 = ignore
    vocab = jax.lax.broadcasted_iota(jnp.int32, x.shape, 1)
    hit = jnp.where(vocab == tgt, x, jnp.zeros_like(x))
    # cast to f32 *before* the cross-row sum (keeps exactness for bf16 logp)
    hit32 = hit.astype(jnp.float32)
    tm, v = x.shape
    acc_ref[...] += hit32.reshape(tm // 8, 8, v).sum(axis=0)

    @pl.when(i == pl.num_programs(1) - 1)
    def _fin():
        out_ref[0, 0] = -jnp.sum(acc_ref[...])         # positive NLL partial sum


# ----------------------------------------------------------------------------
# Kernel 1b: per-row NLL with an arbitrary weight column, optionally fused
#            with log-softmax (raw logits in).
# ----------------------------------------------------------------------------
def _nll_rowwise_kernel(x_ref, tgt_ref, w_ref, out_ref, acc_ref, *, from_logits):
    i = pl.program_id(1)

    @pl.when(i == 0)
    def _init():
        acc_ref[...] = jnp.zeros_like(acc_ref)

    x = x_ref[...]                                     # (TM, V)
    tgt = tgt_ref[...]                                 # (TM, 1) i32, -1 = ignore
    w = w_ref[...]                                     # (TM, 1) f32, 0 = ignore
    vocab = jax.lax.broadcasted_iota(jnp.int32, x.shape, 1)

    if from_logits:
        x32 = x.astype(jnp.float32)
        pick_src = x32
    else:
        pick_src = x
    picked = jnp.sum(jnp.where(vocab == tgt, pick_src, jnp.zeros_like(pick_src)),
                     axis=-1, keepdims=True).astype(jnp.float32)

    if from_logits:
        # fused log-softmax: one streaming pass over the logits (exp -> EUP)
        m = jnp.max(x32, axis=-1, keepdims=True)
        lse = m + jnp.log(jnp.sum(jnp.exp(x32 - m), axis=-1, keepdims=True))
        valid = (tgt >= 0) & (tgt < x.shape[1])
        per_row = jnp.where(valid, lse - picked, 0.0)  # = -logp[tgt]
    else:
        per_row = -picked                              # x already log-probs

    per_row = per_row * w                              # fractional weights OK
    tm = x.shape[0]
    acc_ref[...] += per_row.reshape(tm // 8, 8, 1).sum(axis=0)   # acc (8, 1)

    @pl.when(i == pl.num_programs(1) - 1)
    def _fin():
        out_ref[0, 0] = jnp.sum(acc_ref[...])


def language_model_criterion(scores, targets, mask, *, from_logits=False,
                             assume_binary_mask=True, target_block_bytes=None,
                             num_splits=None):
    """loss = sum(-logp[target] * mask) / sum(mask).

    `scores` are log-probabilities (module semantics).  Set from_logits=True to
    pass raw logits and fuse the log-softmax into the kernel (~3x less HBM
    traffic end-to-end).  assume_binary_mask=True uses the fastest kernel (the
    {0,1} token mask is folded into the target ids); set it to False when the
    mask carries fractional per-token weights.
    """
    B, T, V = scores.shape
    N = B * T
    x2 = scores.reshape(N, V)                          # stream in native dtype
    tgt = targets.reshape(N).astype(jnp.int32)
    w = mask.reshape(N).astype(jnp.float32)

    vmem_cap = _vmem_capacity_bytes()
    if target_block_bytes is None:
        target_block_bytes = _default_block_bytes(vmem_cap)
    row_bytes = V * x2.dtype.itemsize
    # TODO(synk): for extremely wide vocabularies (8 * row_bytes exceeding the
    # block budget) add a vocab grid axis instead of relying on the VMEM limit.
    tile_rows = _pick_tile_rows(N, row_bytes, target_block_bytes)
    total_blocks, num_splits, steps = _split_grid(N, tile_rows, num_splits)
    last_blk = total_blocks - 1
    padded_rows = num_splits * steps * tile_rows
    block_bytes = tile_rows * row_bytes

    rowwise = from_logits or (not assume_binary_mask)
    acc_shape = (8, 1) if rowwise else (8, V)
    vmem_limit = _vmem_limit(block_bytes, acc_shape[0] * acc_shape[1] * 4,
                             vmem_cap)

    # Host-pad the narrow per-row streams to the padded grid extent: padded /
    # boundary / clamped-duplicate rows carry target=-1 (and weight=0), so they
    # contribute exactly zero with no in-kernel row-validity masking.
    if rowwise:
        tgt_p = jnp.full((padded_rows, 1), -1, jnp.int32).at[:N, 0].set(tgt)
        w_p = jnp.zeros((padded_rows, 1), jnp.float32).at[:N, 0].set(w)
    else:
        tgt_b = jnp.where(w > 0, tgt, -1)              # fold binary mask in
        tgt_p = jnp.full((padded_rows, 1), -1, jnp.int32).at[:N, 0].set(tgt_b)

    def x_map(c, i):
        # clamp so excess logical blocks never DMA out of bounds; their padded
        # targets/weights guarantee zero contribution.
        return (jnp.minimum(c * steps + i, last_blk), 0)

    def narrow_map(c, i):
        return (c * steps + i, 0)                      # padded: no clamp needed

    in_specs = [pl.BlockSpec((tile_rows, V), x_map),
                pl.BlockSpec((tile_rows, 1), narrow_map)]
    operands = [x2, tgt_p]
    if rowwise:
        in_specs.append(pl.BlockSpec((tile_rows, 1), narrow_map))
        operands.append(w_p)
        kernel = functools.partial(_nll_rowwise_kernel, from_logits=from_logits)
    else:
        kernel = _nll_binary_kernel

    partial_sums = pl.pallas_call(
        kernel,
        out_shape=jax.ShapeDtypeStruct((num_splits, 1), jnp.float32),
        grid_spec=pltpu.PrefetchScalarGridSpec(
            num_scalar_prefetch=0,
            grid=(num_splits, steps),
            in_specs=in_specs,
            out_specs=pl.BlockSpec((1, 1), lambda c, i: (c, 0),
                                   memory_space=pltpu.SMEM),
            scratch_shapes=[pltpu.VMEM(acc_shape, jnp.float32)]),
        compiler_params=pltpu.CompilerParams(
            dimension_semantics=("parallel", "arbitrary"),
            vmem_limit_bytes=vmem_limit),
        cost_estimate=pl.CostEstimate(
            flops=(5 if from_logits else 3) * N * V,
            transcendentals=(N * V if from_logits else 0),
            bytes_accessed=N * V * x2.dtype.itemsize + padded_rows * 8
                           + num_splits * 4),
    )(*operands)

    mask_sum = jnp.sum(w)
    # NOTE: like the PyTorch reference there is no guard for an all-zero mask.
    return jnp.sum(partial_sums) / mask_sum


# ----------------------------------------------------------------------------
# Kernel 2: MSE reduction (TargetReconstruction hot path)
# ----------------------------------------------------------------------------
def _mse_kernel(r_ref, t_ref, out_ref, acc_ref, *, n_rows, tile_rows,
                steps_per_split):
    i = pl.program_id(1)

    @pl.when(i == 0)
    def _init():
        acc_ref[...] = jnp.zeros_like(acc_ref)

    # NOTE: row0 must come from the *logical* (unclamped) block index even
    # though the DMA index_map clamps — that is what zeroes boundary and
    # clamped-duplicate blocks.
    row0 = (pl.program_id(0) * steps_per_split + i) * tile_rows
    d = r_ref[...].astype(jnp.float32) - t_ref[...].astype(jnp.float32)
    tm, dd = d.shape
    full = row0 + tile_rows <= n_rows

    @pl.when(full)
    def _fast():                                       # interior block: no select
        acc_ref[...] += (d * d).reshape(tm // 8, 8, dd).sum(axis=0)

    @pl.when(jnp.logical_not(full))
    def _masked():                                     # boundary / duplicated block
        rows = row0 + jax.lax.broadcasted_iota(jnp.int32, (tm, 1), 0)
        dm = jnp.where(rows < n_rows, d, 0.0)
        acc_ref[...] += (dm * dm).reshape(tm // 8, 8, dd).sum(axis=0)

    @pl.when(i == pl.num_programs(1) - 1)
    def _fin():
        out_ref[0, 0] = jnp.sum(acc_ref[...])


def target_reconstruction_mse(recon, target, *, target_block_bytes=None,
                              num_splits=None):
    """loss = mean((recon - target)^2)   (nn.MSELoss default reduction)."""
    B, D = recon.shape
    vmem_cap = _vmem_capacity_bytes()
    if target_block_bytes is None:
        target_block_bytes = _default_block_bytes(vmem_cap)
    row_bytes = D * (recon.dtype.itemsize + target.dtype.itemsize)
    tile_rows = _pick_tile_rows(B, row_bytes, target_block_bytes)
    total_blocks, num_splits, steps = _split_grid(B, tile_rows, num_splits)
    last_blk = total_blocks - 1
    vmem_limit = _vmem_limit(tile_rows * row_bytes, 8 * D * 4, vmem_cap)

    def row_map(c, i):
        return (jnp.minimum(c * steps + i, last_blk), 0)

    kernel = functools.partial(_mse_kernel, n_rows=B, tile_rows=tile_rows,
                               steps_per_split=steps)

    sq_partials = pl.pallas_call(
        kernel,
        out_shape=jax.ShapeDtypeStruct((num_splits, 1), jnp.float32),
        grid_spec=pltpu.PrefetchScalarGridSpec(
            num_scalar_prefetch=0,
            grid=(num_splits, steps),
            in_specs=[pl.BlockSpec((tile_rows, D), row_map),
                      pl.BlockSpec((tile_rows, D), row_map)],
            out_specs=pl.BlockSpec((1, 1), lambda c, i: (c, 0),
                                   memory_space=pltpu.SMEM),
            scratch_shapes=[pltpu.VMEM((8, D), jnp.float32)]),
        compiler_params=pltpu.CompilerParams(
            dimension_semantics=("parallel", "arbitrary"),
            vmem_limit_bytes=vmem_limit),
        cost_estimate=pl.CostEstimate(
            flops=3 * B * D, transcendentals=0,
            bytes_accessed=B * D * (recon.dtype.itemsize
                                    + target.dtype.itemsize) + num_splits * 4),
    )(recon, target)

    return jnp.sum(sq_partials) / jnp.float32(B * D)


# ----------------------------------------------------------------------------
# DecodingLoss forward (glue in plain JAX, scalar math only)
# ----------------------------------------------------------------------------
class _NS:
    def __init__(self, **kw):
        self.__dict__.update(kw)


def make_config(input_decoding=True, use_constraint=True):
    return _NS(
        model=_NS(target_decoder=_NS(input_decoding=input_decoding)),
        criterion=_NS(reconstruction_metric="mse"),
        reconstruction_constraint=_NS(
            use_constraint=use_constraint,
            bound=0.5,
            start_val=1.0,     # deterministic init of the Lagrange multiplier
            alpha=0.9,
        ),
    )


def decoding_loss_forward(config, reconstructions, targets, mask,
                          lagrange_multiplier):
    if config.model.target_decoder.input_decoding:
        # module semantics: `reconstructions` are log-probabilities.
        reconstruction_loss = language_model_criterion(reconstructions,
                                                       targets, mask)
    else:
        reconstruction_loss = target_reconstruction_mse(reconstructions, targets)

    if config.reconstruction_constraint.use_constraint:
        # Constraint(bound, 'le'):  multiplier * (value - bound)
        bound = jnp.float32(config.reconstruction_constraint.bound)
        constraint_loss = lagrange_multiplier * (reconstruction_loss - bound)
        # TODO(synk): ConstraintOptimizer (SGD step on the multiplier) is
        # training-loop state, not part of the forward pass — omitted here.
        return constraint_loss, reconstruction_loss
    else:
        return reconstruction_loss, reconstruction_loss


# ----------------------------------------------------------------------------
# Demo / correctness check
# ----------------------------------------------------------------------------
if __name__ == "__main__":
    keys = jax.random.split(jax.random.PRNGKey(0), 10)

    B, T, V, D = 2, 8, 32, 32

    # ---- input-decoding branch ----
    logits = jax.random.normal(keys[0], (B, T, V), dtype=jnp.float32)
    logp = jax.nn.log_softmax(logits, axis=-1)          # model emits log-probs
    targets = jax.random.randint(keys[1], (B, T), 0, V, dtype=jnp.int32)
    mask = (jax.random.uniform(keys[2], (B, T)) > 0.25).astype(jnp.float32)
    mask = mask.at[:, 0].set(1.0)                       # ensure non-empty mask

    cfg_in = make_config(input_decoding=True, use_constraint=True)
    lam = jnp.float32(cfg_in.reconstruction_constraint.start_val)

    c_loss, r_loss = decoding_loss_forward(cfg_in, logp, targets, mask, lam)
    jax.block_until_ready((c_loss, r_loss))

    picked_ref = jnp.take_along_axis(logp, targets[..., None], axis=-1)[..., 0]
    r_ref = jnp.sum(-picked_ref * mask) / jnp.sum(mask)
    c_ref = lam * (r_ref - cfg_in.reconstruction_constraint.bound)
    assert jnp.allclose(r_loss, r_ref, rtol=1e-5, atol=1e-5)
    assert jnp.allclose(c_loss, c_ref, rtol=1e-5, atol=1e-5)

    # fused log-softmax path (raw logits in; ~3x less HBM traffic end-to-end)
    r_fused = language_model_criterion(logits, targets, mask, from_logits=True)
    jax.block_until_ready(r_fused)
    assert jnp.allclose(r_fused, r_ref, rtol=1e-5, atol=1e-5)

    # fractional (non-binary) mask -> weighted kernel path
    frac_mask = jax.random.uniform(keys[3], (B, T), minval=0.0, maxval=1.0)
    r_w = language_model_criterion(logp, targets, frac_mask,
                                   assume_binary_mask=False)
    jax.block_until_ready(r_w)
    r_w_ref = jnp.sum(-picked_ref * frac_mask) / jnp.sum(frac_mask)
    assert jnp.allclose(r_w, r_w_ref, rtol=1e-5, atol=1e-5)

    # multi-block + forced dual core split with an odd block count, so the
    # clamped-duplicate-block path (zero contribution) is exercised.
    B3 = 3
    logits3 = jax.random.normal(keys[4], (B3, T, V), dtype=jnp.float32)
    logp3 = jax.nn.log_softmax(logits3, axis=-1)
    targets3 = jax.random.randint(keys[5], (B3, T), 0, V, dtype=jnp.int32)
    mask3 = (jax.random.uniform(keys[6], (B3, T)) > 0.25).astype(jnp.float32)
    mask3 = mask3.at[:, 0].set(1.0)
    p3 = jnp.take_along_axis(logp3, targets3[..., None], axis=-1)[..., 0]
    r3_ref = jnp.sum(-p3 * mask3) / jnp.sum(mask3)
    r3 = language_model_criterion(logp3, targets3, mask3,
                                  target_block_bytes=8 * V * 4, num_splits=2)
    jax.block_until_ready(r3)
    assert jnp.allclose(r3, r3_ref, rtol=1e-5, atol=1e-5)
    r3f = language_model_criterion(logits3, targets3, mask3, from_logits=True,
                                   target_block_bytes=8 * V * 4, num_splits=2)
    jax.block_until_ready(r3f)
    assert jnp.allclose(r3f, r3_ref, rtol=1e-5, atol=1e-5)

    # ---- latent-decoding branch ----
    recon = jax.random.normal(keys[7], (B, D), dtype=jnp.float32)
    latent = jax.random.normal(keys[8], (B, D), dtype=jnp.float32)
    cfg_lat = make_config(input_decoding=False, use_constraint=False)
    l1, l2 = decoding_loss_forward(cfg_lat, recon, latent, None, lam)
    jax.block_until_ready((l1, l2))
    mse_ref = jnp.mean((recon - latent) ** 2)
    assert jnp.allclose(l1, mse_ref, rtol=1e-5, atol=1e-5)
    assert jnp.allclose(l2, mse_ref, rtol=1e-5, atol=1e-5)

    # multi-block MSE with an odd block count + forced dual split
    rec2 = jax.random.normal(keys[9], (24, D), dtype=jnp.float32)
    lat2 = jax.random.normal(keys[0], (24, D), dtype=jnp.float32)
    mse2 = target_reconstruction_mse(rec2, lat2,
                                     target_block_bytes=8 * D * 8, num_splits=2)
    jax.block_until_ready(mse2)
    assert jnp.allclose(mse2, jnp.mean((rec2 - lat2) ** 2),
                        rtol=1e-5, atol=1e-5)

    print("KERNEL_OK")
</pallas_src>

<mosaic_0001>
module attributes {stable_mosaic.version = 11 : i64} {
  func.func @_nll_binary_kernel(%arg0: i32, %arg1: i32, %arg2: memref<16x32xf32, #tpu.memory_space<vmem>>, %arg3: memref<16x1xi32, #tpu.memory_space<vmem>>, %arg4: memref<1x1xf32, #tpu.memory_space<smem>>, %arg5: memref<8x32xf32, #tpu.memory_space<vmem>>) attributes {dimension_semantics = [#tpu.dimension_semantics<parallel>, #tpu.dimension_semantics<arbitrary>], iteration_bounds = array<i64: 1, 1>, scalar_prefetch = 0 : i64, scratch_operands = 1 : i64, tpu.core_type = #tpu.core_type<tc>, window_params = [{transform_indices = @transform_0, window_bounds = array<i64: 16, 32>}, {transform_indices = @transform_1, window_bounds = array<i64: 16, 1>}, {transform_indices = @transform_2, window_bounds = array<i64: 1, 1>}]} {
    %c0_i32 = arith.constant 0 : i32
    %0 = arith.cmpi eq, %arg1, %c0_i32 : i32
    %1 = arith.extui %0 : i1 to i32
    %c0_i32_0 = arith.constant 0 : i32
    %2 = arith.cmpi ne, %1, %c0_i32_0 : i32
    scf.if %2 {
      %cst_11 = arith.constant 0.000000e+00 : f32
      %18 = vector.broadcast %cst_11 : f32 to vector<8x32xf32>
      %c0_12 = arith.constant 0 : index
      %c0_13 = arith.constant 0 : index
      %19 = vector.load %arg5[%c0_12, %c0_13] : memref<8x32xf32, #tpu.memory_space<vmem>>, vector<8x32xf32>
      tpu.vector_store %arg5[%c0_12, %c0_13], %18 {strides = array<i32>} : memref<8x32xf32, #tpu.memory_space<vmem>>, vector<8x32xf32>,
    } else {
    }
    %c0 = arith.constant 0 : index
    %c0_1 = arith.constant 0 : index
    %3 = vector.load %arg2[%c0, %c0_1] : memref<16x32xf32, #tpu.memory_space<vmem>>, vector<16x32xf32>
    %c0_2 = arith.constant 0 : index
    %c0_3 = arith.constant 0 : index
    %4 = vector.load %arg3[%c0_2, %c0_3] : memref<16x1xi32, #tpu.memory_space<vmem>>, vector<16x1xi32>
    %5 = tpu.iota {dimensions = array<i32: 1>} : vector<16x32xi32>
    %6 = vector.broadcast %4 : vector<16x1xi32> to vector<16x32xi32>
    %7 = arith.cmpi eq, %5, %6 : vector<16x32xi32>
    %cst = arith.constant 0.000000e+00 : f32
    %8 = vector.broadcast %cst : f32 to vector<16x32xf32>
    %9 = arith.select %7, %3, %8 : vector<16x32xi1>, vector<16x32xf32>
    %c0_4 = arith.constant 0 : index
    %c0_5 = arith.constant 0 : index
    %10 = vector.load %arg5[%c0_4, %c0_5] : memref<8x32xf32, #tpu.memory_space<vmem>>, vector<8x32xf32>
    %11 = vector.shape_cast %9 : vector<16x32xf32> to vector<2x8x32xf32>
    %cst_6 = arith.constant dense<0.000000e+00> : vector<8x32xf32>
    %12 = vector.multi_reduction <add>, %11, %cst_6 [0] : vector<2x8x32xf32> to vector<8x32xf32>
    %13 = arith.addf %10, %12 : vector<8x32xf32>
    %c0_7 = arith.constant 0 : index
    %c0_8 = arith.constant 0 : index
    %14 = vector.load %arg5[%c0_7, %c0_8] : memref<8x32xf32, #tpu.memory_space<vmem>>, vector<8x32xf32>
    tpu.vector_store %arg5[%c0_7, %c0_8], %13 {strides = array<i32>} : memref<8x32xf32, #tpu.memory_space<vmem>>, vector<8x32xf32>,
    %c0_i32_9 = arith.constant 0 : i32
    %15 = arith.cmpi eq, %arg1, %c0_i32_9 : i32
    %16 = arith.extui %15 : i1 to i32
    %c0_i32_10 = arith.constant 0 : i32
    %17 = arith.cmpi ne, %16, %c0_i32_10 : i32
    scf.if %17 {
      %c0_11 = arith.constant 0 : index
      %c0_12 = arith.constant 0 : index
      %18 = vector.load %arg5[%c0_11, %c0_12] : memref<8x32xf32, #tpu.memory_space<vmem>>, vector<8x32xf32>
      %19 = vector.shape_cast %18 : vector<8x32xf32> to vector<1x8x32xf32>
      %cst_13 = arith.constant dense<0.000000e+00> : vector<1xf32>
      %20 = vector.multi_reduction <add>, %19, %cst_13 [1, 2] : vector<1x8x32xf32> to vector<1xf32>
      %21 = vector.shape_cast %20 : vector<1xf32> to vector<1x1x1xf32>
      %22 = vector.extract %21[0, 0, 0] : f32 from vector<1x1x1xf32>
      %cst_14 = arith.constant 0.000000e+00 : f32
      %23 = arith.subf %cst_14, %22 : f32
      %c0_15 = arith.constant 0 : index
      %c0_16 = arith.constant 0 : index
      %24 = memref.load %arg4[%c0_15, %c0_16] : memref<1x1xf32, #tpu.memory_space<smem>>
      memref.store %23, %arg4[%c0_15, %c0_16] : memref<1x1xf32, #tpu.memory_space<smem>>
    } else {
    }
    return
  }
  func.func @transform_0(%arg0: i32, %arg1: i32) -> (i32, i32) {
    %c1_i32 = arith.constant 1 : i32
    %0 = arith.muli %arg0, %c1_i32 : i32
    %1 = arith.addi %0, %arg1 : i32
    %c0_i32 = arith.constant 0 : i32
    %2 = arith.minsi %1, %c0_i32 : i32
    %c0_i32_0 = arith.constant 0 : i32
    %c0_i32_1 = arith.constant 0 : i32
    return %2, %c0_i32_0 : i32, i32
  }
  func.func @transform_1(%arg0: i32, %arg1: i32) -> (i32, i32) {
    %c1_i32 = arith.constant 1 : i32
    %0 = arith.muli %arg0, %c1_i32 : i32
    %1 = arith.addi %0, %arg1 : i32
    %c0_i32 = arith.constant 0 : i32
    %c0_i32_0 = arith.constant 0 : i32
    return %1, %c0_i32 : i32, i32
  }
  func.func @transform_2(%arg0: i32, %arg1: i32) -> (i32, i32) {
    %c0_i32 = arith.constant 0 : i32
    %c0_i32_0 = arith.constant 0 : i32
    return %arg0, %c0_i32 : i32, i32
  }
}

</mosaic_0001>

<bundles_post_ra>
// kernel: tpu_custom_call.1
= control target key start
LH: loop header
LB: loop body
LE: loop exit
PB: predicated region body
PF: predicated region fallthrough
CT: control target
= control target key end

     0   :  { %s202_s0 = inlined_call_operand.vmem [shape: f32[16,32], index: 0, kind: input, shape index: {}]   ;;  %s203_s1 = inlined_call_operand.vmem [shape: s32[16,1], index: 1, kind: input, shape index: {}]   ;;  %s204_s2 = inlined_call_operand.hbm [shape: f32[1,1], index: 2, kind: output, shape index: {}]  }
   0x1   :  { %v74_v0 = vld [vmem:[%s203_s1] sm:$0xff] }
   0x2   :  { %7 = vsyncpa [#allocation4], 0  ;;  %v155_v1 = vmov 0   ;;  %vm70_vm0 = vcmask 261120   ;;  %v75_v2 = vld [vmem:[%s203_s1 + $0x8] sm:$0xff]  ;;  %v156_v3 = vmov 0.0   ;;  %v76_v4 = vlaneseq }
   0x3   :  { %142 = vset.pattern.permute.xlu0 %v155_v1  ;;  %71 = vst.msk [vmem:[#allocation2] sm:$0xff] %vm70_vm0, %v156_v3  ;;  %v72_v7 = vld [vmem:[%s202_s0] sm:$0xff]  ;;  %v73_v8 = vld [vmem:[%s202_s0 + $0x8] sm:$0xff]  ;;  %s143_s19 = scalar_lea.hbm %s204_s2, 16 }
   0x4   :  { %79 = vperm.xlu0 %142, %v74_v0   ;;  %v77_v5 = vand.u32 127, %v76_v4  ;;  %p144_p0 = scmp.ne.s32.totalorder %s204_s2, %s143_s19  ;;  %p147_p1 = scmp.lt.u32.totalorder %s143_s19, %s204_s2 }
   0x6   :  { %p149_p2 = pnand %p147_p1, %p144_p0 }
   0x8   :  { %82 = vperm.xlu0 %142, %v75_v2  }
   0xa   :  { %v88_v13 = vld [vmem:[#allocation2] sm:$0xff] }
  0x83   :  { %v80_v6 = vpop.permute.xlu0 %79 }
  0x84   :  { %vm84_vm1 = vcmp.eq.s32.totalorder %v77_v5, %v80_v6 }
  0x85   :  { %v86_v9 = vsel %vm84_vm1, %v72_v7, 0.0 }
  0x86   :  { %v90_v12 = vsel %vm70_vm0, %v86_v9, 0.0 }
  0x87   :  { %v83_v10 = vpop.permute.xlu0 %82 }
  0x88   :  { %vm85_vm2 = vcmp.eq.s32.totalorder %v77_v5, %v83_v10 }
  0x89   :  { %v87_v11 = vsel %vm85_vm2, %v73_v8, 0.0 }
  0x8a   :  { %v91_v14 = vsel %vm70_vm0, %v87_v11, 0.0 }
  0x8b   :  { %v92_v15 = vadd.f32 %v91_v14, %v90_v12 }
  0x8d   :  { %v93_v16 = vadd.f32 %v92_v15, %v88_v13 }
  0x8f   :  { %94 = vst.msk [vmem:[#allocation2] sm:$0xff] %vm70_vm0, %v93_v16 }
  0x96   :  { %v98_v17 = vld [vmem:[#allocation2] sm:$0xff] }
  0x97   :  { %v99_v18 = vsel %vm70_vm0, %v98_v17, 0.0 }
  0x98   :  { %100 = vadd.xlane.f32.xlu1 %v99_v18 }
 0x125   :  { %v101_v19 = vpop.xlane.xlu1 %100 }
 0x126   :  { %v102_v20 = vrot.slane %v101_v19, 4 }
 0x128   :  { %v103_v21 = vadd.f32 %v102_v20, %v101_v19 }
 0x12a   :  { %v104_v22 = vrot.slane %v103_v21, 2 }
 0x12c   :  { %v105_v23 = vadd.f32 %v104_v22, %v103_v21 }
 0x12e   :  { %v106_v24 = vrot.slane %v105_v23, 1 }
 0x130   :  { %v107_v25 = vadd.f32 %v106_v24, %v105_v23 }
 0x132   :  { %137 = vpush %v107_v25 }
 0x163   :  { %s138_s0 = spop %137 }
 0x164   :  { %s109_s1 = ssub.f32 0.0, %s138_s0 }
 0x166   :  { %111 = sst [smem:[#allocation3]] %s109_s1 }
 0x167   :  { %152 = shalt.err (!%p149_p2)
}
 0x168   :  { %s157_s24 = smov [#allocation3]  }
 0x169   :  { %119 = dma.smem_to_hbm %s157_s24, 16, %s204_s2, [#allocation4]  }
 0x16a   :  { %153 = dma.done.wait [#allocation4], 16  }
 0x16b   :  { %154 = vsyncadd [#allocation4], 4294967280 }
 0x16c   :  { %123 = sfence }
 0x16d   :  { %124 = vsyncpa [#allocation4], 1 }

</bundles_post_ra>
